<compile_context>
chip_gen: v7x
topology: tpu7x:2x2x1
jax: 0.10.0
libtpu: 0.0.40
codegen_flags: <defaults>
</compile_context>

<pallas_src>
import itertools
import random

import jax
import jax.numpy as jnp
from jax.experimental import pallas as pl
from jax.experimental.pallas import tpu as pltpu


def _round_up(x, m):
    return ((x + m - 1) // m) * m


def _make_agg_kernel(max_keep, num_entities):
    inv_keep = 1.0 / float(max_keep)

    def agg_kernel(ids_ref, table_ref, w_ref, o_ref):
        tn = o_ref.shape[0]
        ids = ids_ref[...]                                                # (tn, max_keep) int32
        eids = jax.lax.broadcasted_iota(jnp.int32, (tn, num_entities), 1)

        # Histogram of sampled neighbor ids per center node (VPU compares/adds).
        # max_keep is small and static -> unroll; each step is a (tn, E) compare+add.
        counts = jnp.zeros((tn, num_entities), jnp.float32)
        for k in range(max_keep):
            counts = counts + (ids[:, k : k + 1] == eids).astype(jnp.float32)

        # Gather-as-matmul:  sum_k table[ids[:, k]] == counts @ table   (MXU).
        # counts holds small exact integers, so casting to the table dtype (e.g. bf16)
        # is exact; accumulate in f32.
        pooled = jnp.dot(
            counts.astype(table_ref.dtype),
            table_ref[...],
            preferred_element_type=jnp.float32,
        )                                                                  # (tn, D_pad) f32

        # Mean + pool matmul: fold 1/max_keep into w (D_pad^2 muls, not tn*D_pad),
        # feed the MXU operands in w's native dtype, accumulate in f32.
        w_scaled = (w_ref[...].astype(jnp.float32) * inv_keep).astype(w_ref.dtype)
        o_ref[...] = jnp.dot(
            pooled.astype(w_ref.dtype),
            w_scaled,
            preferred_element_type=jnp.float32,
        ).astype(o_ref.dtype)

    return agg_kernel


def _vmem_budget_bytes():
    """~50% of this generation's VMEM (v5e/v6e: 64 MiB of 128; v7x: 32 MiB of 64)."""
    try:
        cap = int(pltpu.get_tpu_info().vmem_capacity_bytes)
    except Exception:
        cap = 64 << 20  # conservative fallback (works on every generation)
    return max(cap // 2, 16 << 20)


def _choose_tile_n(n, per_row_bytes, resident_bytes, budget_bytes):
    """Largest sublane-aligned N tile under the VMEM budget; for large N, force
    >=2 grid steps (each still >=512 rows) so v7x's two TensorCores both work."""
    fits_whole = resident_bytes + n * per_row_bytes <= budget_bytes
    if fits_whole and n < 1024:
        return n  # tiny problem: one grid step, no megacore upside
    tn = max(8, (int((budget_bytes - resident_bytes) // per_row_bytes) // 8) * 8)
    tn = min(tn, _round_up(n, 8))
    if n >= 1024:
        tn = min(tn, _round_up(pl.cdiv(n, 2), 8))
    return int(max(tn, 8))


def fast_pool_aggregate(samp_ids, feature_table, pool_matrix, *, max_keep, tile_n=None):
    """Fused FastPoolAggregator hot path.

    samp_ids      : (max_keep * N,) int32, k-major (the module's flat sample list)
    feature_table : (num_entities, D) embedding table (self.features)
    pool_matrix   : (D, D) pool matrix (self.pool_matrix[mode])
    returns (N, D) == mean_k( feature_table[samp_ids].view(max_keep, N, D)[k] @ pool_matrix )
    """
    num_entities, d = feature_table.shape
    assert pool_matrix.shape == (d, d)
    n = samp_ids.shape[0] // max_keep
    assert samp_ids.shape == (max_keep * n,)

    out_dtype = jnp.promote_types(feature_table.dtype, pool_matrix.dtype)

    # Lane-dense layout: pad D to a multiple of 128 so table/w/out minor dims fill
    # whole vregs and output stores are unmasked.  Wrapper slices back afterwards.
    d_pad = _round_up(d, 128)
    table_p = feature_table if d_pad == d else jnp.pad(feature_table, ((0, 0), (0, d_pad - d)))
    w_p = pool_matrix if d_pad == d else jnp.pad(pool_matrix, ((0, d_pad - d), (0, d_pad - d)))

    # k-major flat ids -> (N, max_keep): node rows on sublanes, k on lanes.
    ids_nk = samp_ids.reshape(max_keep, n).T.astype(jnp.int32)

    budget = _vmem_budget_bytes()
    itemsize = jnp.dtype(out_dtype).itemsize
    # Honest VMEM accounting: minor dims rounded up to 128 lanes, x2 for double
    # buffering on every BlockSpec (table/w have constant index_maps but are
    # counted conservatively).
    per_row = 2 * _round_up(max_keep, 128) * 4 + 2 * d_pad * itemsize
    resident = (2 * num_entities * d_pad * jnp.dtype(table_p.dtype).itemsize
                + 2 * d_pad * d_pad * jnp.dtype(w_p.dtype).itemsize)
    if tile_n is None:
        tile_n = _choose_tile_n(n, per_row, resident, budget)
    grid_n = pl.cdiv(n, tile_n)

    kernel = _make_agg_kernel(max_keep, num_entities)
    out_pad = pl.pallas_call(
        kernel,
        out_shape=jax.ShapeDtypeStruct((n, d_pad), out_dtype),
        grid_spec=pltpu.PrefetchScalarGridSpec(
            num_scalar_prefetch=0,
            grid=(grid_n,),
            in_specs=[
                pl.BlockSpec((tile_n, max_keep), lambda i: (i, 0)),        # sample ids
                pl.BlockSpec((num_entities, d_pad), lambda i: (0, 0)),     # table (VMEM-resident)
                pl.BlockSpec((d_pad, d_pad), lambda i: (0, 0)),            # pool matrix
            ],
            out_specs=pl.BlockSpec((tile_n, d_pad), lambda i: (i, 0)),
        ),
        compiler_params=pltpu.CompilerParams(
            # N tiles are independent -> shard across TensorCores on v7x.
            dimension_semantics=("parallel",),
            vmem_limit_bytes=int(budget),
        ),
    )(ids_nk, table_p, w_p)

    return out_pad[:, :d] if d_pad != d else out_pad


def xavier_uniform(key, shape, dtype=jnp.float32):
    # Matches torch.nn.init.xavier_uniform for a 2-D weight (gain=1).
    fan_in, fan_out = shape[0], shape[1]
    bound = float(jnp.sqrt(6.0 / (fan_in + fan_out)))
    return jax.random.uniform(key, shape, dtype=dtype, minval=-bound, maxval=bound)


if __name__ == "__main__":
    # --- deterministic setup (mirrors FastPoolAggregator.__init__ + forward glue) ---
    feat_dim = 32           # feature_dims[mode]
    num_nodes = 8           # len(to_neighs)
    num_entities = 64       # size of the feature/embedding table
    max_keep = 10

    key = jax.random.PRNGKey(0)
    k_feat, k_pool = jax.random.split(key)

    # features(node_list) -> embedding lookup into this table
    feature_table = jax.random.normal(k_feat, (num_entities, feat_dim), dtype=jnp.float32)
    # self.pool_matrix[mode] : (feat_dim, feat_dim), xavier_uniform init
    pool_matrix = xavier_uniform(k_pool, (feat_dim, feat_dim))

    # Build to_neighs: each node gets a small deterministic neighbor list.
    rng = random.Random(0)
    to_neighs = [
        [rng.randrange(num_entities) for _ in range(rng.randint(3, 7))]
        for _ in range(num_nodes)
    ]

    # Sample max_keep neighbors WITH replacement per node, exactly like the module:
    # [to_neigh[int(random()*len(to_neigh))] for i in repeat(None, max_keep) for to_neigh in to_neighs]
    _random = rng.random
    samp_neighs = [
        to_neigh[int(_random() * len(to_neigh))]
        for _ in itertools.repeat(None, max_keep)
        for to_neigh in to_neighs
    ]
    samp_ids = jnp.asarray(samp_neighs, dtype=jnp.int32)            # (max_keep * N,)

    # --- hot path fully in Pallas: fused gather (histogram @ table) + pool matmul ---
    out = fast_pool_aggregate(samp_ids, feature_table, pool_matrix, max_keep=max_keep)
    out = jax.block_until_ready(out)

    # Reference check (pure JAX), same semantics as the PyTorch module.
    embeds = jnp.take(feature_table, samp_ids, axis=0).reshape(max_keep, num_nodes, feat_dim)
    ref = jnp.mean(jnp.einsum("knd,de->kne", embeds, pool_matrix), axis=0)
    assert out.shape == (num_nodes, feat_dim)
    assert jnp.allclose(out, ref, atol=1e-5, rtol=1e-5)

    print("KERNEL_OK")
</pallas_src>

<mosaic_0001>
module attributes {stable_mosaic.version = 11 : i64} {
  func.func @agg_kernel(%arg0: i32, %arg1: memref<8x10xi32, #tpu.memory_space<vmem>>, %arg2: memref<64x128xf32, #tpu.memory_space<vmem>>, %arg3: memref<128x128xf32, #tpu.memory_space<vmem>>, %arg4: memref<8x128xf32, #tpu.memory_space<vmem>>) attributes {dimension_semantics = [#tpu.dimension_semantics<parallel>], iteration_bounds = array<i64: 1>, scalar_prefetch = 0 : i64, scratch_operands = 0 : i64, tpu.core_type = #tpu.core_type<tc>, window_params = [{transform_indices = @transform_0, window_bounds = array<i64: 8, 10>}, {pipeline_mode = #tpu.pipeline_mode<synchronous>, transform_indices = @transform_1, window_bounds = array<i64: 64, 128>}, {pipeline_mode = #tpu.pipeline_mode<synchronous>, transform_indices = @transform_2, window_bounds = array<i64: 128, 128>}, {transform_indices = @transform_3, window_bounds = array<i64: 8, 128>}]} {
    %c0 = arith.constant 0 : index
    %c0_0 = arith.constant 0 : index
    %0 = vector.load %arg1[%c0, %c0_0] : memref<8x10xi32, #tpu.memory_space<vmem>>, vector<8x10xi32>
    %1 = tpu.iota {dimensions = array<i32: 1>} : vector<8x64xi32>
    %cst = arith.constant 0.000000e+00 : f32
    %2 = vector.broadcast %cst : f32 to vector<8x64xf32>
    %3 = vector.extract_strided_slice %0 {offsets = [0, 0], sizes = [8, 1], strides = [1, 1]} : vector<8x10xi32> to vector<8x1xi32>
    %4 = vector.broadcast %3 : vector<8x1xi32> to vector<8x64xi32>
    %5 = arith.cmpi eq, %4, %1 : vector<8x64xi32>
    %6 = arith.extui %5 : vector<8x64xi1> to vector<8x64xi32>
    %7 = arith.sitofp %6 : vector<8x64xi32> to vector<8x64xf32>
    %8 = arith.addf %2, %7 : vector<8x64xf32>
    %9 = vector.extract_strided_slice %0 {offsets = [0, 1], sizes = [8, 1], strides = [1, 1]} : vector<8x10xi32> to vector<8x1xi32>
    %10 = vector.broadcast %9 : vector<8x1xi32> to vector<8x64xi32>
    %11 = arith.cmpi eq, %10, %1 : vector<8x64xi32>
    %12 = arith.extui %11 : vector<8x64xi1> to vector<8x64xi32>
    %13 = arith.sitofp %12 : vector<8x64xi32> to vector<8x64xf32>
    %14 = arith.addf %8, %13 : vector<8x64xf32>
    %15 = vector.extract_strided_slice %0 {offsets = [0, 2], sizes = [8, 1], strides = [1, 1]} : vector<8x10xi32> to vector<8x1xi32>
    %16 = vector.broadcast %15 : vector<8x1xi32> to vector<8x64xi32>
    %17 = arith.cmpi eq, %16, %1 : vector<8x64xi32>
    %18 = arith.extui %17 : vector<8x64xi1> to vector<8x64xi32>
    %19 = arith.sitofp %18 : vector<8x64xi32> to vector<8x64xf32>
    %20 = arith.addf %14, %19 : vector<8x64xf32>
    %21 = vector.extract_strided_slice %0 {offsets = [0, 3], sizes = [8, 1], strides = [1, 1]} : vector<8x10xi32> to vector<8x1xi32>
    %22 = vector.broadcast %21 : vector<8x1xi32> to vector<8x64xi32>
    %23 = arith.cmpi eq, %22, %1 : vector<8x64xi32>
    %24 = arith.extui %23 : vector<8x64xi1> to vector<8x64xi32>
    %25 = arith.sitofp %24 : vector<8x64xi32> to vector<8x64xf32>
    %26 = arith.addf %20, %25 : vector<8x64xf32>
    %27 = vector.extract_strided_slice %0 {offsets = [0, 4], sizes = [8, 1], strides = [1, 1]} : vector<8x10xi32> to vector<8x1xi32>
    %28 = vector.broadcast %27 : vector<8x1xi32> to vector<8x64xi32>
    %29 = arith.cmpi eq, %28, %1 : vector<8x64xi32>
    %30 = arith.extui %29 : vector<8x64xi1> to vector<8x64xi32>
    %31 = arith.sitofp %30 : vector<8x64xi32> to vector<8x64xf32>
    %32 = arith.addf %26, %31 : vector<8x64xf32>
    %33 = vector.extract_strided_slice %0 {offsets = [0, 5], sizes = [8, 1], strides = [1, 1]} : vector<8x10xi32> to vector<8x1xi32>
    %34 = vector.broadcast %33 : vector<8x1xi32> to vector<8x64xi32>
    %35 = arith.cmpi eq, %34, %1 : vector<8x64xi32>
    %36 = arith.extui %35 : vector<8x64xi1> to vector<8x64xi32>
    %37 = arith.sitofp %36 : vector<8x64xi32> to vector<8x64xf32>
    %38 = arith.addf %32, %37 : vector<8x64xf32>
    %39 = vector.extract_strided_slice %0 {offsets = [0, 6], sizes = [8, 1], strides = [1, 1]} : vector<8x10xi32> to vector<8x1xi32>
    %40 = vector.broadcast %39 : vector<8x1xi32> to vector<8x64xi32>
    %41 = arith.cmpi eq, %40, %1 : vector<8x64xi32>
    %42 = arith.extui %41 : vector<8x64xi1> to vector<8x64xi32>
    %43 = arith.sitofp %42 : vector<8x64xi32> to vector<8x64xf32>
    %44 = arith.addf %38, %43 : vector<8x64xf32>
    %45 = vector.extract_strided_slice %0 {offsets = [0, 7], sizes = [8, 1], strides = [1, 1]} : vector<8x10xi32> to vector<8x1xi32>
    %46 = vector.broadcast %45 : vector<8x1xi32> to vector<8x64xi32>
    %47 = arith.cmpi eq, %46, %1 : vector<8x64xi32>
    %48 = arith.extui %47 : vector<8x64xi1> to vector<8x64xi32>
    %49 = arith.sitofp %48 : vector<8x64xi32> to vector<8x64xf32>
    %50 = arith.addf %44, %49 : vector<8x64xf32>
    %51 = vector.extract_strided_slice %0 {offsets = [0, 8], sizes = [8, 1], strides = [1, 1]} : vector<8x10xi32> to vector<8x1xi32>
    %52 = vector.broadcast %51 : vector<8x1xi32> to vector<8x64xi32>
    %53 = arith.cmpi eq, %52, %1 : vector<8x64xi32>
    %54 = arith.extui %53 : vector<8x64xi1> to vector<8x64xi32>
    %55 = arith.sitofp %54 : vector<8x64xi32> to vector<8x64xf32>
    %56 = arith.addf %50, %55 : vector<8x64xf32>
    %57 = vector.extract_strided_slice %0 {offsets = [0, 9], sizes = [8, 1], strides = [1, 1]} : vector<8x10xi32> to vector<8x1xi32>
    %58 = vector.broadcast %57 : vector<8x1xi32> to vector<8x64xi32>
    %59 = arith.cmpi eq, %58, %1 : vector<8x64xi32>
    %60 = arith.extui %59 : vector<8x64xi1> to vector<8x64xi32>
    %61 = arith.sitofp %60 : vector<8x64xi32> to vector<8x64xf32>
    %62 = arith.addf %56, %61 : vector<8x64xf32>
    %c0_1 = arith.constant 0 : index
    %c0_2 = arith.constant 0 : index
    %63 = vector.load %arg2[%c0_1, %c0_2] : memref<64x128xf32, #tpu.memory_space<vmem>>, vector<64x128xf32>
    %cst_3 = arith.constant dense<0.000000e+00> : vector<8x128xf32>
    %64 = tpu.matmul %62, %63, %cst_3 {dimension_numbers = #tpu.dot_dimension_numbers<[1], [0], [0], [1], [0, 0, 1, 1], [], []>} : vector<8x64xf32>, vector<64x128xf32>, vector<8x128xf32> -> vector<8x128xf32>
    %c0_4 = arith.constant 0 : index
    %c0_5 = arith.constant 0 : index
    %65 = vector.load %arg3[%c0_4, %c0_5] : memref<128x128xf32, #tpu.memory_space<vmem>>, vector<128x128xf32>
    %cst_6 = arith.constant 1.000000e-01 : f32
    %66 = vector.broadcast %cst_6 : f32 to vector<128x128xf32>
    %67 = arith.mulf %65, %66 : vector<128x128xf32>
    %cst_7 = arith.constant dense<0.000000e+00> : vector<8x128xf32>
    %68 = tpu.matmul %64, %67, %cst_7 {dimension_numbers = #tpu.dot_dimension_numbers<[1], [0], [0], [1], [0, 0, 1, 1], [], []>} : vector<8x128xf32>, vector<128x128xf32>, vector<8x128xf32> -> vector<8x128xf32>
    %c0_8 = arith.constant 0 : index
    %c0_9 = arith.constant 0 : index
    %69 = vector.load %arg4[%c0_8, %c0_9] : memref<8x128xf32, #tpu.memory_space<vmem>>, vector<8x128xf32>
    tpu.vector_store %arg4[%c0_8, %c0_9], %68 {strides = array<i32>} : memref<8x128xf32, #tpu.memory_space<vmem>>, vector<8x128xf32>,
    return
  }
  func.func @transform_0(%arg0: i32) -> (i32, i32) {
    %c0_i32 = arith.constant 0 : i32
    %c0_i32_0 = arith.constant 0 : i32
    return %arg0, %c0_i32 : i32, i32
  }
  func.func @transform_1(%arg0: i32) -> (i32, i32) {
    %c0_i32 = arith.constant 0 : i32
    %c0_i32_0 = arith.constant 0 : i32
    %c0_i32_1 = arith.constant 0 : i32
    return %c0_i32, %c0_i32_0 : i32, i32
  }
  func.func @transform_2(%arg0: i32) -> (i32, i32) {
    %c0_i32 = arith.constant 0 : i32
    %c0_i32_0 = arith.constant 0 : i32
    %c0_i32_1 = arith.constant 0 : i32
    return %c0_i32, %c0_i32_0 : i32, i32
  }
  func.func @transform_3(%arg0: i32) -> (i32, i32) {
    %c0_i32 = arith.constant 0 : i32
    %c0_i32_0 = arith.constant 0 : i32
    return %arg0, %c0_i32 : i32, i32
  }
}

</mosaic_0001>

<bundles_post_ra>
// kernel: tpu_custom_call.1
= control target key start
LH: loop header
LB: loop body
LE: loop exit
PB: predicated region body
PF: predicated region fallthrough
CT: control target
= control target key end

     0   :  { %8 = vsyncpa [#allocation3], 0  ;;  %s696_s0 = inlined_call_operand.hbm [shape: s32[8,10], index: 0, kind: input, shape index: {}]   ;;  %s697_s1 = inlined_call_operand.hbm [shape: f32[64,128], index: 1, kind: input, shape index: {}]   ;;  %s698_s2 = inlined_call_operand.hbm [shape: f32[128,128], index: 2, kind: input, shape index: {}]   ;;  %s699_s3 = inlined_call_operand.hbm [shape: f32[8,128], index: 3, kind: output, shape index: {}]  }
   0x1   :  { %9 = vsyncpa [#allocation6], 0 }
   0x2   :  { %10 = vsyncpa [#allocation4], 0  ;;  %s579_s12 = smov [#allocation5]   ;;  %s485_s16 = scalar_lea.hbm %s697_s1, 1024 }
   0x3   :  { %s26_s13 = sshll.u32 %s579_s12, 4  ;;  %p486_p0 = scmp.ne.s32.totalorder %s697_s1, %s485_s16  ;;  %s27_s13 = int_to_ptr.vmem [resolvable:$true] %s26_s13 }
   0x4   :  { %p489_p1 = scmp.lt.u32.totalorder %s485_s16, %s697_s1 }
   0x6   :  { %p491_p2 = pnand %p489_p1, %p486_p0 }
   0x8   :  { %494 = shalt.err (!%p491_p2)
}
   0x9   :  { %s495_s21 = scalar_lea.vmem %s27_s13, 1024  ;;  %p500_p4 = scmp.lt.s32.totalorder %s27_s13, %s27_s13 }
   0xa   :  { %p496_p3 = scmp.ne.s32.totalorder %s27_s13, %s495_s21  ;;  %p501_p5 = scmp.lt.s32.totalorder %s495_s21, %s495_s21 }
   0xc   :  { %p502_p6 = por %p501_p5, %p500_p4 }
   0xe   :  { %p503_p7 = pnand %p502_p6, %p496_p3 }
  0x10   :  { %506 = shalt.err (!%p503_p7)
}
  0x11   :  { %s580_s22 = smov 128   ;;  %s581_s23 = smov 8  }
  0x12   :  { %32 = dma.hbm_to_vmem [thread:$0]  %s697_s1, 1024, %s27_s13, [#allocation6], %s580_s22, %s580_s22, %s581_s23  }
  0x13   :  { %s582_s26 = smov [#allocation2]   ;;  %s583_s28 = smov [#allocation7]  }
  0x14   :  { %s17_s27 = sshll.u32 %s582_s26, 4  ;;  %s38_s29 = sshll.u32 %s583_s28, 4  ;;  %s18_s27 = int_to_ptr.vmem [resolvable:$true] %s17_s27  ;;  %s39_s29 = int_to_ptr.vmem [resolvable:$true] %s38_s29 }
  0x15   :  { %s507_s5 = scalar_lea.hbm %s696_s0, 128 }
  0x16   :  { %p508_p8 = scmp.ne.s32.totalorder %s696_s0, %s507_s5  ;;  %p511_p9 = scmp.lt.u32.totalorder %s507_s5, %s696_s0 }
  0x18   :  { %p513_p10 = pnand %p511_p9, %p508_p8 }
  0x1a   :  { %516 = shalt.err (!%p513_p10)
}
  0x1b   :  { %s517_s1 = scalar_lea.vmem %s18_s27, 128  ;;  %p522_p12 = scmp.lt.s32.totalorder %s18_s27, %s18_s27 }
  0x1c   :  { %p518_p11 = scmp.ne.s32.totalorder %s18_s27, %s517_s1  ;;  %p523_p13 = scmp.lt.s32.totalorder %s517_s1, %s517_s1 }
  0x1e   :  { %p524_p0 = por %p523_p13, %p522_p12 }
  0x20   :  { %p525_p1 = pnand %p524_p0, %p518_p11 }
  0x22   :  { %528 = shalt.err (!%p525_p1)
}
  0x23   :  { %20 = dma.hbm_to_vmem [thread:$0]  %s696_s0, 128, %s18_s27, [#allocation3]  }
  0x24   :  { %s529_s14 = scalar_lea.hbm %s698_s2, 2048 }
  0x25   :  { %p530_p2 = scmp.ne.s32.totalorder %s698_s2, %s529_s14  ;;  %p533_p3 = scmp.lt.u32.totalorder %s529_s14, %s698_s2 }
  0x27   :  { %p535_p4 = pnand %p533_p3, %p530_p2 }
  0x29   :  { %538 = shalt.err (!%p535_p4)
}
  0x2a   :  { %s539_s19 = scalar_lea.vmem %s39_s29, 2048  ;;  %p544_p6 = scmp.lt.s32.totalorder %s39_s29, %s39_s29 }
  0x2b   :  { %p540_p5 = scmp.ne.s32.totalorder %s39_s29, %s539_s19  ;;  %p545_p7 = scmp.lt.s32.totalorder %s539_s19, %s539_s19 }
  0x2d   :  { %p546_p8 = por %p545_p7, %p544_p6 }
  0x2f   :  { %p547_p9 = pnand %p546_p8, %p540_p5 }
  0x31   :  { %550 = shalt.err (!%p547_p9)
}
  0x32   :  { %44 = dma.hbm_to_vmem [thread:$0]  %s698_s2, 2048, %s39_s29, [#allocation6], %s580_s22, %s580_s22, %s581_s23  }
  0x33   :  { %573 = dma.done.wait [#allocation3], 128  }
  0x34   :  { %574 = vsyncadd [#allocation3], 4294967168 }
  0x35   :  { %575 = dma.done.wait [#allocation6], 3072  }
  0x36   :  { %576 = vsyncadd [#allocation6], 4294964224  ;;  %v584_v0 = vmov 2   ;;  %v585_v1 = vmov 0   ;;  %v54_v2 = vld [vmem:[#allocation2] sm:$0xff]  ;;  %v586_v3 = vmov 3  }
  0x37   :  { %476 = vset.pattern.permute.xlu1 %v584_v0  ;;  %474 = vset.pattern.permute.xlu0 %v585_v1  ;;  %v587_v4 = vmov 1   ;;  %v588_v5 = vmov 4   ;;  %v589_v6 = vmov 5   ;;  %v127_v7 = vld [vmem:[#allocation5] sm:$0xff]  ;;  %v128_v8 = vld [vmem:[#allocation5 + $0x8] sm:$0xff]  ;;  %v590_v10 = vmov 0.0|0.0  }
  0x38   :  { %72 = vperm.xlu1 %476, %v54_v2   ;;  %58 = vperm.xlu0 %474, %v54_v2   ;;  %v420_v9 = vpack.c.bf16 %v128_v8, %v127_v7  ;;  %v591_v11 = vmov 6   ;;  %v592_v12 = vmov 8   ;;  %v129_v13 = vld [vmem:[#allocation5 + $0x10] sm:$0xff]  ;;  %v130_v14 = vld [vmem:[#allocation5 + $0x18] sm:$0xff]  ;;  %v593_v16 = vmov 7   ;;  %v131_v17 = vld [vmem:[#allocation5 + $0x20] sm:$0xff] }
  0x39   :  { %419 = vmatprep.subr.bf16.mxu0 %v590_v10  ;;  %431 = vmatprep.subr.bf16.mxu1 %v590_v10  ;;  %v423_v15 = vpack.c.bf16 %v130_v14, %v129_v13  ;;  %v132_v18 = vld [vmem:[#allocation5 + $0x28] sm:$0xff]  ;;  %v594_v19 = vmov 9   ;;  %v133_v21 = vld [vmem:[#allocation5 + $0x30] sm:$0xff]  ;;  %v134_v22 = vld [vmem:[#allocation5 + $0x38] sm:$0xff]  ;;  %vm595_vm0 = vmmov 0   ;;  %v596_v24 = vmov 0.0  }
  0x3a   :  { %421 = vmatpush3.bf16.msra.mxu0 %v420_v9  ;;  %v426_v20 = vpack.c.bf16 %v132_v18, %v131_v17  ;;  %v429_v23 = vpack.c.bf16 %v134_v22, %v133_v21  ;;  %381 = vmatprep.mubr.msk.f32.mxu0 %vm595_vm0, %v596_v24  ;;  %v209_v25 = vld [vmem:[#allocation7] sm:$0xff]  ;;  %v210_v26 = vld [vmem:[#allocation7 + $0x8] sm:$0xff]  ;;  %v211_v27 = vld [vmem:[#allocation7 + $0x10] sm:$0xff]  ;;  %v55_v1 = vlaneseq  ;;  %vm135_vm11 = vcmask 523264   ;;  %s597_s2 = smov [#allocation8]  }
  0x3b   :  { %422 = vmatprep.subr.bf16.mxu0 %v590_v10  ;;  %416 = vmatprep.mubr.msk.f32.mxu1 %vm595_vm0, %v596_v24  ;;  %v225_v28 = vmul.f32 0.1, %v209_v25  ;;  %v226_v29 = vmul.f32 0.1, %v210_v26  ;;  %v212_v30 = vld [vmem:[#allocation7 + $0x18] sm:$0xff]  ;;  %v213_v33 = vld [vmem:[#allocation7 + $0x20] sm:$0xff] }
  0x3c   :  { %477 = vset.pattern.permute.xlu1 %v586_v3  ;;  %475 = vset.pattern.permute.xlu0 %v587_v4  ;;  %v227_v31 = vmul.f32 0.1, %v211_v27  ;;  %v228_v32 = vmul.f32 0.1, %v212_v30  ;;  %v214_v34 = vld [vmem:[#allocation7 + $0x28] sm:$0xff]  ;;  %v215_v39 = vld [vmem:[#allocation7 + $0x30] sm:$0xff] }
  0x3d   :  { %79 = vperm.xlu1 %477, %v54_v2   ;;  %65 = vperm.xlu0 %475, %v54_v2   ;;  %v432_v35 = vpack.c.bf16 %v226_v29, %v225_v28  ;;  %v229_v37 = vmul.f32 0.1, %v213_v33  ;;  %v230_v38 = vmul.f32 0.1, %v214_v34  ;;  %v216_v40 = vld [vmem:[#allocation7 + $0x38] sm:$0xff]  ;;  %v217_v44 = vld [vmem:[#allocation7 + $0x40] sm:$0xff] }
  0x3e   :  { %424 = vmatpush3.bf16.msra.mxu0 %v423_v15  ;;  %v435_v36 = vpack.c.bf16 %v228_v32, %v227_v31  ;;  %v231_v42 = vmul.f32 0.1, %v215_v39  ;;  %v232_v43 = vmul.f32 0.1, %v216_v40  ;;  %v218_v45 = vld [vmem:[#allocation7 + $0x48] sm:$0xff]  ;;  %v219_v49 = vld [vmem:[#allocation7 + $0x50] sm:$0xff] }
  0x3f   :  { %425 = vmatprep.subr.bf16.mxu0 %v590_v10  ;;  %433 = vmatpush3.bf16.msra.mxu1 %v432_v35  ;;  %v438_v41 = vpack.c.bf16 %v230_v38, %v229_v37  ;;  %v233_v47 = vmul.f32 0.1, %v217_v44  ;;  %v234_v48 = vmul.f32 0.1, %v218_v45  ;;  %v220_v50 = vld [vmem:[#allocation7 + $0x58] sm:$0xff]  ;;  %v221_v54 = vld [vmem:[#allocation7 + $0x60] sm:$0xff] }
  0x40   :  { %434 = vmatprep.subr.bf16.mxu1 %v590_v10  ;;  %v441_v46 = vpack.c.bf16 %v232_v43, %v231_v42  ;;  %v235_v52 = vmul.f32 0.1, %v219_v49  ;;  %v236_v53 = vmul.f32 0.1, %v220_v50  ;;  %v222_v55 = vld [vmem:[#allocation7 + $0x68] sm:$0xff]  ;;  %v223_v59 = vld [vmem:[#allocation7 + $0x70] sm:$0xff] }
  0x41   :  { %478 = vset.pattern.permute.xlu1 %v588_v5  ;;  %479 = vset.pattern.permute.xlu0 %v589_v6  ;;  %v444_v51 = vpack.c.bf16 %v234_v48, %v233_v47  ;;  %v237_v57 = vmul.f32 0.1, %v221_v54  ;;  %v238_v58 = vmul.f32 0.1, %v222_v55  ;;  %v224_v60 = vld [vmem:[#allocation7 + $0x78] sm:$0xff]  ;;  %s318_s21 = sshll.u32 %s597_s2, 4  ;;  %s319_s21 = int_to_ptr.vmem [resolvable:$true] %s318_s21 }
  0x42   :  { %86 = vperm.xlu1 %478, %v54_v2   ;;  %93 = vperm.xlu0 %479, %v54_v2   ;;  %v447_v56 = vpack.c.bf16 %v236_v53, %v235_v52  ;;  %v239_v62 = vmul.f32 0.1, %v223_v59  ;;  %v240_v63 = vmul.f32 0.1, %v224_v60  ;;  %s551_s22 = scalar_lea.vmem %s319_s21, 128  ;;  %p556_p11 = scmp.lt.s32.totalorder %s319_s21, %s319_s21 }
  0x43   :  { %427 = vmatpush3.bf16.msra.mxu0 %v426_v20  ;;  %436 = vmatpush3.bf16.msra.mxu1 %v435_v36  ;;  %v450_v61 = vpack.c.bf16 %v238_v58, %v237_v57  ;;  %p552_p10 = scmp.ne.s32.totalorder %s319_s21, %s551_s22  ;;  %p557_p12 = scmp.lt.s32.totalorder %s551_s22, %s551_s22 }
  0x44   :  { %428 = vmatprep.subr.bf16.mxu0 %v590_v10  ;;  %437 = vmatprep.subr.bf16.mxu1 %v590_v10  ;;  %v453_v0 = vpack.c.bf16 %v240_v63, %v239_v62 }
  0x45   :  { %p558_p13 = por %p557_p12, %p556_p11 }
  0x46   :  { %480 = vset.pattern.permute.xlu1 %v591_v11  ;;  %482 = vset.pattern.permute.xlu0 %v592_v12 }
  0x47   :  { %100 = vperm.xlu1 %480, %v54_v2   ;;  %114 = vperm.xlu0 %482, %v54_v2   ;;  %p559_p0 = pnand %p558_p13, %p552_p10 }
  0x48   :  { %430 = vmatpush3.bf16.msra.mxu0 %v429_v23  ;;  %439 = vmatpush3.bf16.msra.mxu1 %v438_v41 }
  0x49   :  { %440 = vmatprep.subr.bf16.mxu1 %v590_v10 }
  0x4b   :  { %481 = vset.pattern.permute.xlu1 %v593_v16  ;;  %484 = vset.pattern.permute.xlu0 %v594_v19 }
  0x4c   :  { %107 = vperm.xlu1 %481, %v54_v2   ;;  %442 = vmatpush3.bf16.msra.mxu1 %v441_v46 }
  0x4d   :  { %443 = vmatprep.subr.bf16.mxu1 %v590_v10 }
  0x50   :  { %483 = vset.pattern.permute.xlu1 %v594_v19  ;;  %445 = vmatpush3.bf16.msra.mxu1 %v444_v51 }
  0x51   :  { %121 = vperm.xlu1 %483, %v54_v2   ;;  %446 = vmatprep.subr.bf16.mxu1 %v590_v10  ;;  %v56_v2 = vand.u32 127, %v55_v1 }
  0x54   :  { %448 = vmatpush3.bf16.msra.mxu1 %v447_v56 }
  0x55   :  { %449 = vmatprep.subr.bf16.mxu1 %v590_v10 }
  0x58   :  { %451 = vmatpush3.bf16.msra.mxu1 %v450_v61 }
  0x59   :  { %452 = vmatprep.subr.bf16.mxu1 %v590_v10 }
  0x5c   :  { %454 = vmatpush3.bf16.msra.mxu1 %v453_v0 }
  0xb7   :  { %v73_v3 = vpop.permute.xlu1 %72  ;;  %v59_v4 = vpop.permute.xlu0 %58 }
  0xb8   :  { %vm60_vm1 = vcmp.eq.s32.totalorder %v59_v4, %v56_v2  ;;  %vm74_vm2 = vcmp.eq.s32.totalorder %v73_v3, %v56_v2 }
  0xb9   :  { %v328_v5 = vsel %vm60_vm1, 1.0, %v596_v24  ;;  %v330_v11 = vsel %vm74_vm2, 1.0, %v596_v24 }
  0xbc   :  { %v80_v6 = vpop.permute.xlu1 %79  ;;  %v66_v7 = vpop.permute.xlu0 %65 }
  0xbd   :  { %vm67_vm3 = vcmp.eq.s32.totalorder %v66_v7, %v56_v2  ;;  %vm81_vm4 = vcmp.eq.s32.totalorder %v80_v6, %v56_v2 }
  0xbe   :  { %v329_v8 = vsel %vm67_vm3, 1.0, %v596_v24  ;;  %v331_v14 = vsel %vm81_vm4, 1.0, %v596_v24 }
  0xbf   :  { %v70_v9 = vadd.f32 %v329_v8, %v328_v5 }
  0xc1   :  { %v77_v12 = vadd.f32 %v330_v11, %v70_v9  ;;  %v87_v10 = vpop.permute.xlu1 %86  ;;  %v94_v13 = vpop.permute.xlu0 %93 }
  0xc2   :  { %vm88_vm5 = vcmp.eq.s32.totalorder %v87_v10, %v56_v2  ;;  %vm95_vm6 = vcmp.eq.s32.totalorder %v94_v13, %v56_v2 }
  0xc3   :  { %v84_v15 = vadd.f32 %v331_v14, %v77_v12  ;;  %v332_v16 = vsel %vm88_vm5, 1.0, %v596_v24  ;;  %v333_v18 = vsel %vm95_vm6, 1.0, %v596_v24 }
  0xc5   :  { %v91_v17 = vadd.f32 %v332_v16, %v84_v15 }
  0xc6   :  { %v101_v19 = vpop.permute.xlu1 %100  ;;  %v115_v20 = vpop.permute.xlu0 %114 }
  0xc7   :  { %vm102_vm7 = vcmp.eq.s32.totalorder %v101_v19, %v56_v2  ;;  %v98_v21 = vadd.f32 %v333_v18, %v91_v17  ;;  %vm116_vm8 = vcmp.eq.s32.totalorder %v115_v20, %v56_v2 }
  0xc8   :  { %v334_v22 = vsel %vm102_vm7, 1.0, %v596_v24  ;;  %v336_v27 = vsel %vm116_vm8, 1.0, %v596_v24 }
  0xc9   :  { %v105_v25 = vadd.f32 %v334_v22, %v98_v21 }
  0xcb   :  { %v108_v23 = vpop.permute.xlu1 %107 }
  0xcc   :  { %vm109_vm9 = vcmp.eq.s32.totalorder %v108_v23, %v56_v2 }
  0xcd   :  { %v335_v26 = vsel %vm109_vm9, 1.0, %v596_v24 }
  0xce   :  { %v112_v28 = vadd.f32 %v335_v26, %v105_v25 }
  0xd0   :  { %v119_v29 = vadd.f32 %v336_v27, %v112_v28  ;;  %v122_v30 = vpop.permute.xlu1 %121 }
  0xd1   :  { %vm123_vm10 = vcmp.eq.s32.totalorder %v122_v30, %v56_v2 }
  0xd2   :  { %v337_v31 = vsel %vm123_vm10, 1.0, %v596_v24 }
  0xd3   :  { %v126_v32 = vadd.f32 %v337_v31, %v119_v29 }
  0xd5   :  { %382 = vmatmul.mubr.msk.f32.vlgmr.msra.gmra.mrb[0].mxu0 %vm135_vm11, %v126_v32 }
 0x1a8   :  { %v205_v33 = vpop.f32.mrb[0].mxu0 }
 0x1a9   :  { %v383_v34 = vpop.f32.mrb[1].mxu0  ;;  %417 = vmatmul.mubr.f32.vlgmr.msra.gmra.mrb[0].mxu1 %v205_v33 }
 0x27c   :  { %v307_v35 = vpop.f32.mrb[0].mxu1 }
 0x27d   :  { %311 = vst [vmem:[#allocation8] sm:$0xff] %v307_v35  ;;  %v418_v36 = vpop.f32.mrb[1].mxu1 }
 0x27e   :  { %562 = shalt.err (!%p559_p0)
}
 0x27f   :  { %s563_s25 = scalar_lea.hbm %s699_s3, 128 }
 0x280   :  { %p564_p1 = scmp.ne.s32.totalorder %s699_s3, %s563_s25  ;;  %p567_p2 = scmp.lt.u32.totalorder %s563_s25, %s699_s3 }
 0x282   :  { %p569_p3 = pnand %p567_p2, %p564_p1 }
 0x284   :  { %572 = shalt.err (!%p569_p3)
}
 0x285   :  { %321 = dma.vmem_to_hbm [thread:$0]  %s319_s21, 128, %s699_s3, [#allocation4]  }
 0x286   :  { %577 = dma.done.wait [#allocation4], 128  }
 0x287   :  { %578 = vsyncadd [#allocation4], 4294967168 }
 0x288   :  { %325 = vsyncpa [#allocation3], 1 }
 0x289   :  { %326 = vsyncpa [#allocation6], 1 }
 0x28a   :  { %327 = vsyncpa [#allocation4], 1 }

</bundles_post_ra>
